<compile_context>
chip_gen: v6e
topology: v6e:2x2x1
jax: 0.10.0
libtpu: 0.0.40
codegen_flags: <defaults>
</compile_context>

<pallas_src>
import jax
import jax.numpy as jnp
from jax.experimental import pallas as pl
from jax.experimental.pallas import tpu as pltpu

LANE = 128
ROW_ALIGN = 16   # sublane multiple for bf16 tiles (also satisfies f32's 8)


def _round_up(x, m):
    return ((x + m - 1) // m) * m


def _cdiv(a, b):
    return (a + b - 1) // b


def _pad_dim(d):
    # 256-align large contraction/hidden dims (v6e/v7x MXU is 256x256);
    # small dims keep the 128-lane minimum (native for v5e's 4x128^2 MXU).
    return _round_up(d, 256) if d >= 256 else _round_up(d, LANE)


def _vmem_capacity_bytes():
    # Generation-aware sizing: 128 MiB on v5e/v6e, 64 MiB per TensorCore on v7x.
    try:
        return int(pltpu.get_tpu_info().vmem_capacity_bytes)
    except Exception:
        return 64 << 20   # conservative fallback (v7x)


# --------------------------- kernels ----------------------------------------

def dann_resident_kernel(x_ref, w1_ref, b1_ref, w2_ref, b2_ref, o_ref):
    """Backbone Linear+ReLU -> GRL(identity) -> domain head, weights resident."""
    # In-kernel bf16 cast (VPU, hidden under MXU/DMA slack) instead of a
    # wrapper-side padded bf16 copy of x.
    xb = x_ref[...].astype(jnp.bfloat16)
    h = jnp.dot(xb, w1_ref[...], preferred_element_type=jnp.float32)
    h = jnp.maximum(h + b1_ref[...], 0.0)
    # GRL is identity in the forward pass (alpha only scales the backward).
    y = jnp.dot(h.astype(w2_ref.dtype), w2_ref[...],
                preferred_element_type=jnp.float32)
    o_ref[...] = (y + b2_ref[...]).astype(o_ref.dtype)


def dann_ktiled_kernel(x_ref, w1_ref, b1_ref, w2_ref, b2_ref, o_ref, acc_ref):
    """Fallback when W1 does not fit resident: stream W1 along K (last grid
    axis, "arbitrary") into an f32 accumulator; epilogue on the last K step."""
    k = pl.program_id(1)

    @pl.when(k == 0)
    def _():
        acc_ref[...] = jnp.zeros_like(acc_ref)

    acc_ref[...] += jnp.dot(x_ref[...].astype(jnp.bfloat16), w1_ref[...],
                            preferred_element_type=jnp.float32)

    @pl.when(k == pl.num_programs(1) - 1)
    def _():
        h = jnp.maximum(acc_ref[...] + b1_ref[...], 0.0)
        y = jnp.dot(h.astype(w2_ref.dtype), w2_ref[...],
                    preferred_element_type=jnp.float32)
        o_ref[...] = (y + b2_ref[...]).astype(o_ref.dtype)


# --------------------------- wrapper -----------------------------------------

def prepare_dann_params(w1, b1, w2, b2):
    """Pad + cast parameters ONCE (hoisted out of the per-call path).

    w1: (in_dim, H)  b1: (H,) or (1, H)   -- synthetic backbone Linear+ReLU
    w2: (H, 2)       b2: (2,) or (1, 2)   -- DANN domain-classifier head
    """
    in_dim, hidden = w1.shape
    out_dim = w2.shape[-1]
    k_pad = _pad_dim(in_dim)
    h_pad = _pad_dim(hidden)
    n_pad = _round_up(out_dim, LANE)   # lane-dense output stores

    w1b = jnp.zeros((k_pad, h_pad), jnp.bfloat16).at[:in_dim, :hidden].set(
        w1.astype(jnp.bfloat16))
    b1f = jnp.zeros((1, h_pad), jnp.float32).at[:, :hidden].set(
        jnp.reshape(b1, (1, -1)).astype(jnp.float32))
    w2b = jnp.zeros((h_pad, n_pad), jnp.bfloat16).at[:hidden, :out_dim].set(
        w2.astype(jnp.bfloat16))
    b2f = jnp.zeros((1, n_pad), jnp.float32).at[:, :out_dim].set(
        jnp.reshape(b2, (1, -1)).astype(jnp.float32))
    return {"w1": w1b, "b1": b1f, "w2": w2b, "b2": b2f,
            "in_dim": in_dim, "hidden": hidden, "out_dim": out_dim}


def dann_forward(x, params, *, alpha=1.0, tile_b=None, out_dtype=jnp.bfloat16,
                 force_k_tiling=False):
    """x: (B, in_dim) in its native dtype; params from prepare_dann_params."""
    del alpha  # identity in forward; see TODO(synk) about custom_vjp above.
    w1b, b1f, w2b, b2f = params["w1"], params["b1"], params["w2"], params["b2"]
    in_dim, out_dim = params["in_dim"], params["out_dim"]
    B = x.shape[0]
    assert x.shape[1] == in_dim, (x.shape, in_dim)
    k_pad, h_pad = w1b.shape
    n_pad = w2b.shape[1]

    x_isz = jnp.dtype(x.dtype).itemsize
    o_isz = jnp.dtype(out_dtype).itemsize

    # ---------------- VMEM budget (generation-aware) ----------------
    cap = _vmem_capacity_bytes()
    budget = (3 * cap) // 4           # ~48 MiB (v7x) / ~96 MiB (v5e, v6e)
    wbuf = 2                          # budget assumes default double-buffering
    weights_bytes = (k_pad * h_pad + h_pad * n_pad) * 2 + (h_pad + n_pad) * 4
    head_bytes = h_pad * n_pad * 2 + (h_pad + n_pad) * 4

    def resident_step(tb):
        return (2 * tb * k_pad * x_isz       # x tile, double-buffered
                + 2 * tb * n_pad * o_isz     # out tile, double-buffered
                + tb * k_pad * 2             # in-kernel bf16 cast of x tile
                + tb * h_pad * 4)            # f32 h intermediate

    def ktiled_step(tb, tk):
        return (2 * tb * tk * x_isz + 2 * tk * h_pad * 2   # x tile + W1 slice
                + 2 * tb * n_pad * o_isz
                + tb * tk * 2 + tb * h_pad * 4)             # bf16 cast + f32 acc

    use_resident = (not force_k_tiling) and (
        wbuf * weights_bytes + resident_step(ROW_ALIGN) <= budget)

    if tile_b is not None:
        # User-supplied tile: force sublane alignment (bf16 packing = 16 rows).
        tile_b = max(ROW_ALIGN, _round_up(int(tile_b), ROW_ALIGN))

    tile_k = None
    if use_resident:
        if tile_b is None:
            tb = 1024
            while tb > ROW_ALIGN and wbuf * weights_bytes + resident_step(tb) > budget:
                tb //= 2
            tile_b = max(ROW_ALIGN, tb)
    else:
        if tile_b is None:
            tile_b = 256
        for cand in (1024, 512, 256, 128):
            if k_pad % cand == 0 and \
                    wbuf * head_bytes + ktiled_step(tile_b, cand) <= budget:
                tile_k = cand
                break
        if tile_k is None:
            tile_k = LANE
            while tile_b > ROW_ALIGN and \
                    wbuf * head_bytes + ktiled_step(tile_b, tile_k) > budget:
                tile_b = max(ROW_ALIGN, tile_b // 2)
        # TODO(synk): if the (H_pad, N_pad) head itself exceeds VMEM an extra
        #             H-tiling pass would be needed; not implemented.

    # Bound last-tile waste and keep >= 2 grid steps for megacore when B allows.
    n_tiles = _cdiv(B, tile_b)
    if n_tiles == 1 and B > ROW_ALIGN:
        n_tiles = 2
    tile_b = _round_up(_cdiv(B, n_tiles), ROW_ALIGN)
    b_pad = tile_b * _cdiv(B, tile_b)

    # Pad x only when needed; dtype stays native (cast happens in-kernel).
    if (b_pad != B) or (k_pad != in_dim):
        xp = jnp.zeros((b_pad, k_pad), x.dtype).at[:B, :in_dim].set(x)
    else:
        xp = x

    flops = 2 * b_pad * (k_pad * h_pad + h_pad * n_pad)
    bytes_accessed = (b_pad * k_pad * x_isz + weights_bytes
                      + b_pad * n_pad * o_isz)
    vmem_limit = int(budget)

    def _resident_spec(shape, single, grid_rank):
        imap = (lambda i: (0, 0)) if grid_rank == 1 else (lambda i, k: (0, 0))
        if single:
            return pl.BlockSpec(shape, imap, pipeline_mode=pl.Buffered(1))
        return pl.BlockSpec(shape, imap)

    def _run(single_buffer_weights):
        if use_resident:
            return pl.pallas_call(
                dann_resident_kernel,
                out_shape=jax.ShapeDtypeStruct((b_pad, n_pad), out_dtype),
                grid=(b_pad // tile_b,),
                in_specs=[
                    pl.BlockSpec((tile_b, k_pad), lambda i: (i, 0)),
                    _resident_spec((k_pad, h_pad), single_buffer_weights, 1),
                    _resident_spec((1, h_pad), single_buffer_weights, 1),
                    _resident_spec((h_pad, n_pad), single_buffer_weights, 1),
                    _resident_spec((1, n_pad), single_buffer_weights, 1),
                ],
                out_specs=pl.BlockSpec((tile_b, n_pad), lambda i: (i, 0)),
                compiler_params=pltpu.CompilerParams(
                    dimension_semantics=("parallel",),
                    vmem_limit_bytes=vmem_limit),
                cost_estimate=pl.CostEstimate(
                    flops=flops, transcendentals=0,
                    bytes_accessed=bytes_accessed),
            )(xp, w1b, b1f, w2b, b2f)
        return pl.pallas_call(
            dann_ktiled_kernel,
            out_shape=jax.ShapeDtypeStruct((b_pad, n_pad), out_dtype),
            grid=(b_pad // tile_b, k_pad // tile_k),
            in_specs=[
                pl.BlockSpec((tile_b, tile_k), lambda i, k: (i, k)),
                pl.BlockSpec((tile_k, h_pad), lambda i, k: (k, 0)),
                _resident_spec((1, h_pad), single_buffer_weights, 2),
                _resident_spec((h_pad, n_pad), single_buffer_weights, 2),
                _resident_spec((1, n_pad), single_buffer_weights, 2),
            ],
            out_specs=pl.BlockSpec((tile_b, n_pad), lambda i, k: (i, 0)),
            scratch_shapes=[pltpu.VMEM((tile_b, h_pad), jnp.float32)],
            compiler_params=pltpu.CompilerParams(
                dimension_semantics=("parallel", "arbitrary"),
                vmem_limit_bytes=vmem_limit),
            cost_estimate=pl.CostEstimate(
                flops=flops, transcendentals=0, bytes_accessed=bytes_accessed),
        )(xp, w1b, b1f, w2b, b2f)

    try:
        out_padded = _run(True)
    except Exception:
        # pipeline_mode=pl.Buffered(1) is not available/accepted on every jax
        # version; fall back to default (double-buffered) resident operands.
        out_padded = _run(False)

    return out_padded[:B, :out_dim].astype(x.dtype)


def dann_reference(x, w1, b1, w2, b2):
    h = jnp.maximum(x @ w1 + jnp.reshape(b1, (1, -1)), 0.0)
    return h @ w2 + jnp.reshape(b2, (1, -1))


if __name__ == "__main__":
    key = jax.random.PRNGKey(0)
    k_x, k_w1, k_b1, k_w2, k_b2 = jax.random.split(key, 5)

    batch, in_dim, hidden_dim, out_dim = 8, 32, 64, 2

    x = jax.random.normal(k_x, (batch, in_dim), dtype=jnp.float32)

    # Deterministic parameter init (uniform, PyTorch-Linear-style bounds).
    bound1 = 1.0 / (in_dim ** 0.5)
    w1 = jax.random.uniform(k_w1, (in_dim, hidden_dim), jnp.float32, -bound1, bound1)
    b1 = jax.random.uniform(k_b1, (1, hidden_dim), jnp.float32, -bound1, bound1)

    bound2 = 1.0 / (hidden_dim ** 0.5)
    w2 = jax.random.uniform(k_w2, (hidden_dim, out_dim), jnp.float32, -bound2, bound2)
    b2 = jax.random.uniform(k_b2, (1, out_dim), jnp.float32, -bound2, bound2)

    params = prepare_dann_params(w1, b1, w2, b2)   # pad/cast weights ONCE

    out = dann_forward(x, params, alpha=1.0)
    out = jax.block_until_ready(out)

    ref = dann_reference(x, w1, b1, w2, b2)
    assert out.shape == (batch, out_dim), out.shape
    # bf16 matmul operands / bf16 stores vs. f32 reference -> relaxed tolerance.
    assert jnp.allclose(out, ref, atol=3e-2, rtol=3e-2), "resident path mismatch"

    # Exercise the K-tiled fallback path as well (same forward semantics).
    out_kt = jax.block_until_ready(dann_forward(x, params, force_k_tiling=True))
    assert out_kt.shape == (batch, out_dim), out_kt.shape
    assert jnp.allclose(out_kt, ref, atol=3e-2, rtol=3e-2), "k-tiled path mismatch"

    print("KERNEL_OK")
</pallas_src>

<mosaic_0001>
module attributes {stable_mosaic.version = 11 : i64} {
  func.func @dann_resident_kernel(%arg0: i32, %arg1: memref<16x128xf32, #tpu.memory_space<vmem>>, %arg2: memref<128x128xbf16, #tpu.memory_space<vmem>>, %arg3: memref<1x128xf32, #tpu.memory_space<vmem>>, %arg4: memref<128x128xbf16, #tpu.memory_space<vmem>>, %arg5: memref<1x128xf32, #tpu.memory_space<vmem>>, %arg6: memref<16x128xbf16, #tpu.memory_space<vmem>>) attributes {dimension_semantics = [#tpu.dimension_semantics<parallel>], iteration_bounds = array<i64: 1>, scalar_prefetch = 0 : i64, scratch_operands = 0 : i64, tpu.core_type = #tpu.core_type<tc>, window_params = [{transform_indices = @transform_0, window_bounds = array<i64: 16, 128>}, {pipeline_mode = #tpu.pipeline_mode<synchronous>, transform_indices = @transform_1, window_bounds = array<i64: 128, 128>}, {pipeline_mode = #tpu.pipeline_mode<synchronous>, transform_indices = @transform_2, window_bounds = array<i64: 1, 128>}, {pipeline_mode = #tpu.pipeline_mode<synchronous>, transform_indices = @transform_3, window_bounds = array<i64: 128, 128>}, {pipeline_mode = #tpu.pipeline_mode<synchronous>, transform_indices = @transform_4, window_bounds = array<i64: 1, 128>}, {transform_indices = @transform_5, window_bounds = array<i64: 16, 128>}]} {
    %c0 = arith.constant 0 : index
    %c0_0 = arith.constant 0 : index
    %0 = vector.load %arg1[%c0, %c0_0] : memref<16x128xf32, #tpu.memory_space<vmem>>, vector<16x128xf32>
    %1 = arith.truncf %0 : vector<16x128xf32> to vector<16x128xbf16>
    %c0_1 = arith.constant 0 : index
    %c0_2 = arith.constant 0 : index
    %2 = vector.load %arg2[%c0_1, %c0_2] : memref<128x128xbf16, #tpu.memory_space<vmem>>, vector<128x128xbf16>
    %cst = arith.constant dense<0.000000e+00> : vector<16x128xf32>
    %3 = tpu.matmul %1, %2, %cst {dimension_numbers = #tpu.dot_dimension_numbers<[1], [0], [0], [1], [0, 0, 1, 1], [], []>} : vector<16x128xbf16>, vector<128x128xbf16>, vector<16x128xf32> -> vector<16x128xf32>
    %c0_3 = arith.constant 0 : index
    %c0_4 = arith.constant 0 : index
    %4 = vector.load %arg3[%c0_3, %c0_4] : memref<1x128xf32, #tpu.memory_space<vmem>>, vector<1x128xf32>
    %5 = vector.broadcast %4 : vector<1x128xf32> to vector<16x128xf32>
    %6 = arith.addf %3, %5 : vector<16x128xf32>
    %cst_5 = arith.constant 0.000000e+00 : f32
    %7 = vector.broadcast %cst_5 : f32 to vector<16x128xf32>
    %8 = arith.maximumf %6, %7 : vector<16x128xf32>
    %9 = arith.truncf %8 : vector<16x128xf32> to vector<16x128xbf16>
    %c0_6 = arith.constant 0 : index
    %c0_7 = arith.constant 0 : index
    %10 = vector.load %arg4[%c0_6, %c0_7] : memref<128x128xbf16, #tpu.memory_space<vmem>>, vector<128x128xbf16>
    %cst_8 = arith.constant dense<0.000000e+00> : vector<16x128xf32>
    %11 = tpu.matmul %9, %10, %cst_8 {dimension_numbers = #tpu.dot_dimension_numbers<[1], [0], [0], [1], [0, 0, 1, 1], [], []>} : vector<16x128xbf16>, vector<128x128xbf16>, vector<16x128xf32> -> vector<16x128xf32>
    %c0_9 = arith.constant 0 : index
    %c0_10 = arith.constant 0 : index
    %12 = vector.load %arg5[%c0_9, %c0_10] : memref<1x128xf32, #tpu.memory_space<vmem>>, vector<1x128xf32>
    %13 = vector.broadcast %12 : vector<1x128xf32> to vector<16x128xf32>
    %14 = arith.addf %11, %13 : vector<16x128xf32>
    %15 = arith.truncf %14 : vector<16x128xf32> to vector<16x128xbf16>
    %c0_11 = arith.constant 0 : index
    %c0_12 = arith.constant 0 : index
    %16 = vector.load %arg6[%c0_11, %c0_12] : memref<16x128xbf16, #tpu.memory_space<vmem>>, vector<16x128xbf16>
    tpu.vector_store %arg6[%c0_11, %c0_12], %15 {strides = array<i32>} : memref<16x128xbf16, #tpu.memory_space<vmem>>, vector<16x128xbf16>,
    return
  }
  func.func @transform_0(%arg0: i32) -> (i32, i32) {
    %c0_i32 = arith.constant 0 : i32
    %c0_i32_0 = arith.constant 0 : i32
    return %arg0, %c0_i32 : i32, i32
  }
  func.func @transform_1(%arg0: i32) -> (i32, i32) {
    %c0_i32 = arith.constant 0 : i32
    %c0_i32_0 = arith.constant 0 : i32
    %c0_i32_1 = arith.constant 0 : i32
    return %c0_i32, %c0_i32_0 : i32, i32
  }
  func.func @transform_2(%arg0: i32) -> (i32, i32) {
    %c0_i32 = arith.constant 0 : i32
    %c0_i32_0 = arith.constant 0 : i32
    %c0_i32_1 = arith.constant 0 : i32
    return %c0_i32, %c0_i32_0 : i32, i32
  }
  func.func @transform_3(%arg0: i32) -> (i32, i32) {
    %c0_i32 = arith.constant 0 : i32
    %c0_i32_0 = arith.constant 0 : i32
    %c0_i32_1 = arith.constant 0 : i32
    return %c0_i32, %c0_i32_0 : i32, i32
  }
  func.func @transform_4(%arg0: i32) -> (i32, i32) {
    %c0_i32 = arith.constant 0 : i32
    %c0_i32_0 = arith.constant 0 : i32
    %c0_i32_1 = arith.constant 0 : i32
    return %c0_i32, %c0_i32_0 : i32, i32
  }
  func.func @transform_5(%arg0: i32) -> (i32, i32) {
    %c0_i32 = arith.constant 0 : i32
    %c0_i32_0 = arith.constant 0 : i32
    return %arg0, %c0_i32 : i32, i32
  }
}

module attributes {stable_mosaic.version = 11 : i64} {
  func.func @dann_resident_kernel(%arg0: i32, %arg1: memref<16x128xf32, #tpu.memory_space<vmem>>, %arg2: memref<128x128xbf16, #tpu.memory_space<vmem>>, %arg3: memref<1x128xf32, #tpu.memory_space<vmem>>, %arg4: memref<128x128xbf16, #tpu.memory_space<vmem>>, %arg5: memref<1x128xf32, #tpu.memory_space<vmem>>, %arg6: memref<16x128xbf16, #tpu.memory_space<vmem>>) attributes {dimension_semantics = [#tpu.dimension_semantics<parallel>], iteration_bounds = array<i64: 1>, scalar_prefetch = 0 : i64, scratch_operands = 0 : i64, tpu.core_type = #tpu.core_type<tc>, window_params = [{transform_indices = @transform_0, window_bounds = array<i64: 16, 128>}, {pipeline_mode = #tpu.pipeline_mode<synchronous>, transform_indices = @transform_1, window_bounds = array<i64: 128, 128>}, {pipeline_mode = #tpu.pipeline_mode<synchronous>, transform_indices = @transform_2, window_bounds = array<i64: 1, 128>}, {pipeline_mode = #tpu.pipeline_mode<synchronous>, transform_indices = @transform_3, window_bounds = array<i64: 128, 128>}, {pipeline_mode = #tpu.pipeline_mode<synchronous>, transform_indices = @transform_4, window_bounds = array<i64: 1, 128>}, {transform_indices = @transform_5, window_bounds = array<i64: 16, 128>}]} {
    %c0 = arith.constant 0 : index
    %c0_0 = arith.constant 0 : index
    %0 = vector.load %arg1[%c0, %c0_0] : memref<16x128xf32, #tpu.memory_space<vmem>>, vector<16x128xf32>
    %1 = arith.truncf %0 : vector<16x128xf32> to vector<16x128xbf16>
    %c0_1 = arith.constant 0 : index
    %c0_2 = arith.constant 0 : index
    %2 = vector.load %arg2[%c0_1, %c0_2] : memref<128x128xbf16, #tpu.memory_space<vmem>>, vector<128x128xbf16>
    %cst = arith.constant dense<0.000000e+00> : vector<16x128xf32>
    %3 = tpu.matmul %1, %2, %cst {dimension_numbers = #tpu.dot_dimension_numbers<[1], [0], [0], [1], [0, 0, 1, 1], [], []>} : vector<16x128xbf16>, vector<128x128xbf16>, vector<16x128xf32> -> vector<16x128xf32>
    %c0_3 = arith.constant 0 : index
    %c0_4 = arith.constant 0 : index
    %4 = vector.load %arg3[%c0_3, %c0_4] : memref<1x128xf32, #tpu.memory_space<vmem>>, vector<1x128xf32>
    %5 = vector.broadcast %4 : vector<1x128xf32> to vector<16x128xf32>
    %6 = arith.addf %3, %5 : vector<16x128xf32>
    %cst_5 = arith.constant 0.000000e+00 : f32
    %7 = vector.broadcast %cst_5 : f32 to vector<16x128xf32>
    %8 = arith.maximumf %6, %7 : vector<16x128xf32>
    %9 = arith.truncf %8 : vector<16x128xf32> to vector<16x128xbf16>
    %c0_6 = arith.constant 0 : index
    %c0_7 = arith.constant 0 : index
    %10 = vector.load %arg4[%c0_6, %c0_7] : memref<128x128xbf16, #tpu.memory_space<vmem>>, vector<128x128xbf16>
    %cst_8 = arith.constant dense<0.000000e+00> : vector<16x128xf32>
    %11 = tpu.matmul %9, %10, %cst_8 {dimension_numbers = #tpu.dot_dimension_numbers<[1], [0], [0], [1], [0, 0, 1, 1], [], []>} : vector<16x128xbf16>, vector<128x128xbf16>, vector<16x128xf32> -> vector<16x128xf32>
    %c0_9 = arith.constant 0 : index
    %c0_10 = arith.constant 0 : index
    %12 = vector.load %arg5[%c0_9, %c0_10] : memref<1x128xf32, #tpu.memory_space<vmem>>, vector<1x128xf32>
    %13 = vector.broadcast %12 : vector<1x128xf32> to vector<16x128xf32>
    %14 = arith.addf %11, %13 : vector<16x128xf32>
    %15 = arith.truncf %14 : vector<16x128xf32> to vector<16x128xbf16>
    %c0_11 = arith.constant 0 : index
    %c0_12 = arith.constant 0 : index
    %16 = vector.load %arg6[%c0_11, %c0_12] : memref<16x128xbf16, #tpu.memory_space<vmem>>, vector<16x128xbf16>
    tpu.vector_store %arg6[%c0_11, %c0_12], %15 {strides = array<i32>} : memref<16x128xbf16, #tpu.memory_space<vmem>>, vector<16x128xbf16>,
    return
  }
  func.func @transform_0(%arg0: i32) -> (i32, i32) {
    %c0_i32 = arith.constant 0 : i32
    %c0_i32_0 = arith.constant 0 : i32
    return %arg0, %c0_i32 : i32, i32
  }
  func.func @transform_1(%arg0: i32) -> (i32, i32) {
    %c0_i32 = arith.constant 0 : i32
    %c0_i32_0 = arith.constant 0 : i32
    %c0_i32_1 = arith.constant 0 : i32
    return %c0_i32, %c0_i32_0 : i32, i32
  }
  func.func @transform_2(%arg0: i32) -> (i32, i32) {
    %c0_i32 = arith.constant 0 : i32
    %c0_i32_0 = arith.constant 0 : i32
    %c0_i32_1 = arith.constant 0 : i32
    return %c0_i32, %c0_i32_0 : i32, i32
  }
  func.func @transform_3(%arg0: i32) -> (i32, i32) {
    %c0_i32 = arith.constant 0 : i32
    %c0_i32_0 = arith.constant 0 : i32
    %c0_i32_1 = arith.constant 0 : i32
    return %c0_i32, %c0_i32_0 : i32, i32
  }
  func.func @transform_4(%arg0: i32) -> (i32, i32) {
    %c0_i32 = arith.constant 0 : i32
    %c0_i32_0 = arith.constant 0 : i32
    %c0_i32_1 = arith.constant 0 : i32
    return %c0_i32, %c0_i32_0 : i32, i32
  }
  func.func @transform_5(%arg0: i32) -> (i32, i32) {
    %c0_i32 = arith.constant 0 : i32
    %c0_i32_0 = arith.constant 0 : i32
    return %arg0, %c0_i32 : i32, i32
  }
}

</mosaic_0001>

<bundles_post_ra>
// kernel: tpu_custom_call.1
= control target key start
LH: loop header
LB: loop body
LE: loop exit
PB: predicated region body
PF: predicated region fallthrough
CT: control target
= control target key end

     0   :  { %10 = vsyncpa [#allocation3], 0  ;;  %s585_s0 = inlined_call_operand.hbm [shape: f32[16,128], index: 0, kind: input, shape index: {}]   ;;  %s586_s1 = inlined_call_operand.hbm [shape: bf16[128,128], index: 1, kind: input, shape index: {}]   ;;  %s587_s2 = inlined_call_operand.vmem [shape: f32[1,128], index: 2, kind: input, shape index: {}]   ;;  %s588_s3 = inlined_call_operand.hbm [shape: bf16[128,128], index: 3, kind: input, shape index: {}]   ;;  %s589_s4 = inlined_call_operand.vmem [shape: f32[1,128], index: 4, kind: input, shape index: {}]   ;;  %s590_s5 = inlined_call_operand.hbm [shape: bf16[16,128], index: 5, kind: output, shape index: {}]  }
   0x1   :  { %11 = vsyncpa [#allocation6], 0 }
   0x2   :  { %12 = vsyncpa [#allocation4], 0  ;;  %s518_s18 = smov [#allocation5]  }
   0x3   :  { %s30_s19 = sshll.u32 %s518_s18, 4  ;;  %s31_s19 = int_to_ptr.vmem [resolvable:$true] %s30_s19 }
   0x4   :  { %s440_s20 = scalar_lea.vmem %s31_s19, 1024  ;;  %p445_p1 = scmp.lt.s32.totalorder %s31_s19, %s31_s19 }
   0x5   :  { %p441_p0 = scmp.ne.s32.totalorder %s31_s19, %s440_s20  ;;  %p446_p2 = scmp.lt.s32.totalorder %s440_s20, %s440_s20 }
   0x7   :  { %p447_p3 = por %p446_p2, %p445_p1 }
   0x9   :  { %p448_p4 = pnand %p447_p3, %p441_p0 }
   0xb   :  { %451 = shalt.err (!%p448_p4)
}
   0xc   :  { %s519_s21 = smov 64   ;;  %s520_s22 = smov 4  }
   0xd   :  { %36 = dma.hbm_to_vmem [thread:$0]  %s586_s1, 1024, %s31_s19, [#allocation6], %s519_s21, %s519_s21, %s520_s22  }
   0xe   :  { %s521_s25 = smov [#allocation2]  }
   0xf   :  { %s18_s26 = sshll.u32 %s521_s25, 4  ;;  %s19_s26 = int_to_ptr.vmem [resolvable:$true] %s18_s26 }
  0x10   :  { %s460_s27 = scalar_lea.vmem %s19_s26, 256  ;;  %p465_p6 = scmp.lt.s32.totalorder %s19_s26, %s19_s26 }
  0x11   :  { %p461_p5 = scmp.ne.s32.totalorder %s19_s26, %s460_s27  ;;  %p466_p7 = scmp.lt.s32.totalorder %s460_s27, %s460_s27 }
  0x13   :  { %p467_p8 = por %p466_p7, %p465_p6 }
  0x15   :  { %p468_p9 = pnand %p467_p8, %p461_p5 }
  0x17   :  { %471 = shalt.err (!%p468_p9)
}
  0x18   :  { %s522_s28 = smov 128   ;;  %s523_s29 = smov 8  }
  0x19   :  { %24 = dma.hbm_to_vmem [thread:$0]  %s585_s0, 256, %s19_s26, [#allocation3], %s522_s28, %s522_s28, %s523_s29  }
  0x1a   :  { %s524_s7 = smov [#allocation7]  }
  0x1b   :  { %s44_s8 = sshll.u32 %s524_s7, 4  ;;  %s45_s8 = int_to_ptr.vmem [resolvable:$true] %s44_s8 }
  0x1c   :  { %s480_s1 = scalar_lea.vmem %s45_s8, 1024  ;;  %p485_p11 = scmp.lt.s32.totalorder %s45_s8, %s45_s8 }
  0x1d   :  { %p481_p10 = scmp.ne.s32.totalorder %s45_s8, %s480_s1  ;;  %p486_p12 = scmp.lt.s32.totalorder %s480_s1, %s480_s1 }
  0x1f   :  { %p487_p13 = por %p486_p12, %p485_p11 }
  0x21   :  { %p488_p0 = pnand %p487_p13, %p481_p10 }
  0x23   :  { %491 = shalt.err (!%p488_p0)
}
  0x24   :  { %50 = dma.hbm_to_vmem [thread:$0]  %s588_s3, 1024, %s45_s8, [#allocation6], %s519_s21, %s519_s21, %s520_s22  }
  0x25   :  { %512 = dma.done.wait [#allocation3], 256  }
  0x26   :  { %513 = vsyncadd [#allocation3], 4294967040 }
  0x27   :  { %514 = dma.done.wait [#allocation6], 2048  }
  0x28   :  { %515 = vsyncadd [#allocation6], 4294965248  ;;  %v525_v0 = vmov 0.0   ;;  %vm526_vm0 = vmmov 0   ;;  %v416_v1 = vld [vmem:[#allocation5 + $0x38] sm:$0xff]   ;;  %v417_v2 = vld [vmem:[#allocation5 + $0x30] sm:$0xff]  }
  0x29   :  { %366 = vmatprep.subr.bf16.mxu0 %v525_v0  ;;  %382 = vmatprep.mubr.msk.bf16.mxu0 %vm526_vm0, %v525_v0  ;;  %v418_v3 = vld [vmem:[#allocation5 + $0x28] sm:$0xff]   ;;  %v424_v4 = vld [vmem:[#allocation7 + $0x38] sm:$0xff]   ;;  %v419_v5 = vld [vmem:[#allocation5 + $0x20] sm:$0xff]   ;;  %s527_s13 = smov [#allocation8]  }
  0x2a   :  { %386 = vmatprep.subr.bf16.mxu1 %v525_v0  ;;  %402 = vmatprep.mubr.msk.bf16.mxu1 %vm526_vm0, %v525_v0  ;;  %v425_v6 = vld [vmem:[#allocation7 + $0x30] sm:$0xff]   ;;  %v420_v7 = vld [vmem:[#allocation5 + $0x18] sm:$0xff]   ;;  %v426_v8 = vld [vmem:[#allocation7 + $0x28] sm:$0xff]   ;;  %s308_s14 = sshll.u32 %s527_s13, 4  ;;  %s309_s14 = int_to_ptr.vmem [resolvable:$true] %s308_s14 }
  0x2b   :  { %367 = vmatpush3.bf16.msra.mxu0 %v416_v1  ;;  %387 = vmatpush3.bf16.msra.mxu1 %v424_v4  ;;  %v421_v9 = vld [vmem:[#allocation5 + $0x10] sm:$0xff]   ;;  %v427_v10 = vld [vmem:[#allocation7 + $0x20] sm:$0xff]   ;;  %v422_v11 = vld [vmem:[#allocation5 + $0x8] sm:$0xff]   ;;  %p497_p2 = scmp.lt.s32.totalorder %s309_s14, %s309_s14 }
  0x2c   :  { %368 = vmatprep.subr.bf16.mxu0 %v525_v0  ;;  %388 = vmatprep.subr.bf16.mxu1 %v525_v0  ;;  %v428_v12 = vld [vmem:[#allocation7 + $0x18] sm:$0xff]   ;;  %v423_v13 = vld [vmem:[#allocation5] sm:$0xff]   ;;  %v63_v14 = vld [vmem:[#allocation2] sm:$0xff] }
  0x2d   :  { %v64_v15 = vld [vmem:[#allocation2 + $0x8] sm:$0xff]  ;;  %v429_v17 = vld [vmem:[#allocation7 + $0x10] sm:$0xff]   ;;  %v430_v18 = vld [vmem:[#allocation7 + $0x8] sm:$0xff]  }
  0x2e   :  { %v65_v16 = vpack.c.bf16 %v64_v15, %v63_v14  ;;  %v431_v19 = vld [vmem:[#allocation7] sm:$0xff]   ;;  %v321_v20 = vld [vmem:[%s587_s2] ss:$0 sm:$0xff]  ;;  %s492_s2 = scalar_lea.vmem %s309_s14, 128 }
  0x2f   :  { %369 = vmatpush3.bf16.msra.mxu0 %v417_v2  ;;  %389 = vmatpush3.bf16.msra.mxu1 %v425_v6  ;;  %v330_v31 = vld [vmem:[%s589_s4] ss:$0 sm:$0xff]  ;;  %p493_p1 = scmp.ne.s32.totalorder %s309_s14, %s492_s2  ;;  %p498_p3 = scmp.lt.s32.totalorder %s492_s2, %s492_s2 }
  0x30   :  { %370 = vmatprep.subr.bf16.mxu0 %v525_v0  ;;  %390 = vmatprep.subr.bf16.mxu1 %v525_v0 }
  0x31   :  { %p499_p4 = por %p498_p3, %p497_p2 }
  0x33   :  { %371 = vmatpush3.bf16.msra.mxu0 %v418_v3  ;;  %391 = vmatpush3.bf16.msra.mxu1 %v426_v8  ;;  %p500_p5 = pnand %p499_p4, %p493_p1 }
  0x34   :  { %372 = vmatprep.subr.bf16.mxu0 %v525_v0  ;;  %392 = vmatprep.subr.bf16.mxu1 %v525_v0 }
  0x37   :  { %373 = vmatpush3.bf16.msra.mxu0 %v419_v5  ;;  %393 = vmatpush3.bf16.msra.mxu1 %v427_v10 }
  0x38   :  { %374 = vmatprep.subr.bf16.mxu0 %v525_v0  ;;  %394 = vmatprep.subr.bf16.mxu1 %v525_v0 }
  0x3b   :  { %375 = vmatpush3.bf16.msra.mxu0 %v420_v7  ;;  %395 = vmatpush3.bf16.msra.mxu1 %v428_v12 }
  0x3c   :  { %376 = vmatprep.subr.bf16.mxu0 %v525_v0  ;;  %396 = vmatprep.subr.bf16.mxu1 %v525_v0 }
  0x3f   :  { %377 = vmatpush3.bf16.msra.mxu0 %v421_v9  ;;  %397 = vmatpush3.bf16.msra.mxu1 %v429_v17 }
  0x40   :  { %378 = vmatprep.subr.bf16.mxu0 %v525_v0  ;;  %398 = vmatprep.subr.bf16.mxu1 %v525_v0 }
  0x43   :  { %379 = vmatpush3.bf16.msra.mxu0 %v422_v11  ;;  %399 = vmatpush3.bf16.msra.mxu1 %v430_v18 }
  0x44   :  { %380 = vmatprep.subr.bf16.mxu0 %v525_v0  ;;  %400 = vmatprep.subr.bf16.mxu1 %v525_v0 }
  0x47   :  { %381 = vmatpush3.bf16.msra.mxu0 %v423_v13  ;;  %401 = vmatpush3.bf16.msra.mxu1 %v431_v19 }
  0x4a   :  { %383 = vmatmul.mubr.bf16.vlgmr.msra.gmra.mxu0 %v65_v16 }
 0x10a   :  { %v171_v21 = vpop.f32.mrf.mxu0 }
 0x10b   :  { %v172_v23 = vadd.f32 %v321_v20, %v171_v21 }
 0x10c   :  { %v384_v22 = vpop.f32.mrf.mxu0 }
 0x10d   :  { %v178_v27 = vmax.f32 %v172_v23, 0.0 }
 0x10e   :  { %v174_v24 = vpop.f32.mrf.mxu0 }
 0x10f   :  { %v175_v25 = vadd.f32 %v321_v20, %v174_v24 }
 0x110   :  { %v385_v26 = vpop.f32.mrf.mxu0 }
 0x111   :  { %v179_v28 = vmax.f32 %v175_v25, 0.0 }
 0x113   :  { %v180_v29 = vpack.c.bf16 %v179_v28, %v178_v27 }
 0x115   :  { %403 = vmatmul.mubr.bf16.vlgmr.msra.gmra.mxu1 %v180_v29 }
 0x1d5   :  { %v286_v30 = vpop.f32.mrf.mxu1 }
 0x1d6   :  { %v287_v34 = vadd.f32 %v330_v31, %v286_v30 }
 0x1d7   :  { %v404_v32 = vpop.f32.mrf.mxu1 }
 0x1d9   :  { %v289_v33 = vpop.f32.mrf.mxu1 }
 0x1da   :  { %v290_v35 = vadd.f32 %v330_v31, %v289_v33 }
 0x1db   :  { %v405_v36 = vpop.f32.mrf.mxu1 }
 0x1dc   :  { %v346_v37 = vpack.c.bf16 %v290_v35, %v287_v34 }
 0x1de   :  { %347 = vst [vmem:[#allocation8] sm:$0xff] %v346_v37  }
 0x1df   :  { %503 = shalt.err (!%p500_p5)
}
 0x1e0   :  { %314 = dma.vmem_to_hbm [thread:$0]  %s309_s14, 128, %s590_s5, [#allocation4], %s519_s21, %s519_s21, %s520_s22  }
 0x1e1   :  { %516 = dma.done.wait [#allocation4], 128  }
 0x1e2   :  { %517 = vsyncadd [#allocation4], 4294967168 }
 0x1e3   :  { %318 = vsyncpa [#allocation3], 1 }
 0x1e4   :  { %319 = vsyncpa [#allocation6], 1 }
 0x1e5   :  { %320 = vsyncpa [#allocation4], 1 }

// kernel: tpu_custom_call.1
= control target key start
LH: loop header
LB: loop body
LE: loop exit
PB: predicated region body
PF: predicated region fallthrough
CT: control target
= control target key end

     0   :  { %10 = vsyncpa [#allocation3], 0  ;;  %s585_s0 = inlined_call_operand.hbm [shape: f32[16,128], index: 0, kind: input, shape index: {}]   ;;  %s586_s1 = inlined_call_operand.hbm [shape: bf16[128,128], index: 1, kind: input, shape index: {}]   ;;  %s587_s2 = inlined_call_operand.vmem [shape: f32[1,128], index: 2, kind: input, shape index: {}]   ;;  %s588_s3 = inlined_call_operand.hbm [shape: bf16[128,128], index: 3, kind: input, shape index: {}]   ;;  %s589_s4 = inlined_call_operand.vmem [shape: f32[1,128], index: 4, kind: input, shape index: {}]   ;;  %s590_s5 = inlined_call_operand.hbm [shape: bf16[16,128], index: 5, kind: output, shape index: {}]  }
   0x1   :  { %11 = vsyncpa [#allocation6], 0 }
   0x2   :  { %12 = vsyncpa [#allocation4], 0  ;;  %s518_s18 = smov [#allocation5]  }
   0x3   :  { %s30_s19 = sshll.u32 %s518_s18, 4  ;;  %s31_s19 = int_to_ptr.vmem [resolvable:$true] %s30_s19 }
   0x4   :  { %s440_s20 = scalar_lea.vmem %s31_s19, 1024  ;;  %p445_p1 = scmp.lt.s32.totalorder %s31_s19, %s31_s19 }
   0x5   :  { %p441_p0 = scmp.ne.s32.totalorder %s31_s19, %s440_s20  ;;  %p446_p2 = scmp.lt.s32.totalorder %s440_s20, %s440_s20 }
   0x7   :  { %p447_p3 = por %p446_p2, %p445_p1 }
   0x9   :  { %p448_p4 = pnand %p447_p3, %p441_p0 }
   0xb   :  { %451 = shalt.err (!%p448_p4)
}
   0xc   :  { %s519_s21 = smov 64   ;;  %s520_s22 = smov 4  }
   0xd   :  { %36 = dma.hbm_to_vmem [thread:$0]  %s586_s1, 1024, %s31_s19, [#allocation6], %s519_s21, %s519_s21, %s520_s22  }
   0xe   :  { %s521_s25 = smov [#allocation2]  }
   0xf   :  { %s18_s26 = sshll.u32 %s521_s25, 4  ;;  %s19_s26 = int_to_ptr.vmem [resolvable:$true] %s18_s26 }
  0x10   :  { %s460_s27 = scalar_lea.vmem %s19_s26, 256  ;;  %p465_p6 = scmp.lt.s32.totalorder %s19_s26, %s19_s26 }
  0x11   :  { %p461_p5 = scmp.ne.s32.totalorder %s19_s26, %s460_s27  ;;  %p466_p7 = scmp.lt.s32.totalorder %s460_s27, %s460_s27 }
  0x13   :  { %p467_p8 = por %p466_p7, %p465_p6 }
  0x15   :  { %p468_p9 = pnand %p467_p8, %p461_p5 }
  0x17   :  { %471 = shalt.err (!%p468_p9)
}
  0x18   :  { %s522_s28 = smov 128   ;;  %s523_s29 = smov 8  }
  0x19   :  { %24 = dma.hbm_to_vmem [thread:$0]  %s585_s0, 256, %s19_s26, [#allocation3], %s522_s28, %s522_s28, %s523_s29  }
  0x1a   :  { %s524_s7 = smov [#allocation7]  }
  0x1b   :  { %s44_s8 = sshll.u32 %s524_s7, 4  ;;  %s45_s8 = int_to_ptr.vmem [resolvable:$true] %s44_s8 }
  0x1c   :  { %s480_s1 = scalar_lea.vmem %s45_s8, 1024  ;;  %p485_p11 = scmp.lt.s32.totalorder %s45_s8, %s45_s8 }
  0x1d   :  { %p481_p10 = scmp.ne.s32.totalorder %s45_s8, %s480_s1  ;;  %p486_p12 = scmp.lt.s32.totalorder %s480_s1, %s480_s1 }
  0x1f   :  { %p487_p13 = por %p486_p12, %p485_p11 }
  0x21   :  { %p488_p0 = pnand %p487_p13, %p481_p10 }
  0x23   :  { %491 = shalt.err (!%p488_p0)
}
  0x24   :  { %50 = dma.hbm_to_vmem [thread:$0]  %s588_s3, 1024, %s45_s8, [#allocation6], %s519_s21, %s519_s21, %s520_s22  }
  0x25   :  { %512 = dma.done.wait [#allocation3], 256  }
  0x26   :  { %513 = vsyncadd [#allocation3], 4294967040 }
  0x27   :  { %514 = dma.done.wait [#allocation6], 2048  }
  0x28   :  { %515 = vsyncadd [#allocation6], 4294965248  ;;  %v525_v0 = vmov 0.0   ;;  %vm526_vm0 = vmmov 0   ;;  %v416_v1 = vld [vmem:[#allocation5 + $0x38] sm:$0xff]   ;;  %v417_v2 = vld [vmem:[#allocation5 + $0x30] sm:$0xff]  }
  0x29   :  { %366 = vmatprep.subr.bf16.mxu0 %v525_v0  ;;  %382 = vmatprep.mubr.msk.bf16.mxu0 %vm526_vm0, %v525_v0  ;;  %v418_v3 = vld [vmem:[#allocation5 + $0x28] sm:$0xff]   ;;  %v424_v4 = vld [vmem:[#allocation7 + $0x38] sm:$0xff]   ;;  %v419_v5 = vld [vmem:[#allocation5 + $0x20] sm:$0xff]   ;;  %s527_s13 = smov [#allocation8]  }
  0x2a   :  { %386 = vmatprep.subr.bf16.mxu1 %v525_v0  ;;  %402 = vmatprep.mubr.msk.bf16.mxu1 %vm526_vm0, %v525_v0  ;;  %v425_v6 = vld [vmem:[#allocation7 + $0x30] sm:$0xff]   ;;  %v420_v7 = vld [vmem:[#allocation5 + $0x18] sm:$0xff]   ;;  %v426_v8 = vld [vmem:[#allocation7 + $0x28] sm:$0xff]   ;;  %s308_s14 = sshll.u32 %s527_s13, 4  ;;  %s309_s14 = int_to_ptr.vmem [resolvable:$true] %s308_s14 }
  0x2b   :  { %367 = vmatpush3.bf16.msra.mxu0 %v416_v1  ;;  %387 = vmatpush3.bf16.msra.mxu1 %v424_v4  ;;  %v421_v9 = vld [vmem:[#allocation5 + $0x10] sm:$0xff]   ;;  %v427_v10 = vld [vmem:[#allocation7 + $0x20] sm:$0xff]   ;;  %v422_v11 = vld [vmem:[#allocation5 + $0x8] sm:$0xff]   ;;  %p497_p2 = scmp.lt.s32.totalorder %s309_s14, %s309_s14 }
  0x2c   :  { %368 = vmatprep.subr.bf16.mxu0 %v525_v0  ;;  %388 = vmatprep.subr.bf16.mxu1 %v525_v0  ;;  %v428_v12 = vld [vmem:[#allocation7 + $0x18] sm:$0xff]   ;;  %v423_v13 = vld [vmem:[#allocation5] sm:$0xff]   ;;  %v63_v14 = vld [vmem:[#allocation2] sm:$0xff] }
  0x2d   :  { %v64_v15 = vld [vmem:[#allocation2 + $0x8] sm:$0xff]  ;;  %v429_v17 = vld [vmem:[#allocation7 + $0x10] sm:$0xff]   ;;  %v430_v18 = vld [vmem:[#allocation7 + $0x8] sm:$0xff]  }
  0x2e   :  { %v65_v16 = vpack.c.bf16 %v64_v15, %v63_v14  ;;  %v431_v19 = vld [vmem:[#allocation7] sm:$0xff]   ;;  %v321_v20 = vld [vmem:[%s587_s2] ss:$0 sm:$0xff]  ;;  %s492_s2 = scalar_lea.vmem %s309_s14, 128 }
  0x2f   :  { %369 = vmatpush3.bf16.msra.mxu0 %v417_v2  ;;  %389 = vmatpush3.bf16.msra.mxu1 %v425_v6  ;;  %v330_v31 = vld [vmem:[%s589_s4] ss:$0 sm:$0xff]  ;;  %p493_p1 = scmp.ne.s32.totalorder %s309_s14, %s492_s2  ;;  %p498_p3 = scmp.lt.s32.totalorder %s492_s2, %s492_s2 }
  0x30   :  { %370 = vmatprep.subr.bf16.mxu0 %v525_v0  ;;  %390 = vmatprep.subr.bf16.mxu1 %v525_v0 }
  0x31   :  { %p499_p4 = por %p498_p3, %p497_p2 }
  0x33   :  { %371 = vmatpush3.bf16.msra.mxu0 %v418_v3  ;;  %391 = vmatpush3.bf16.msra.mxu1 %v426_v8  ;;  %p500_p5 = pnand %p499_p4, %p493_p1 }
  0x34   :  { %372 = vmatprep.subr.bf16.mxu0 %v525_v0  ;;  %392 = vmatprep.subr.bf16.mxu1 %v525_v0 }
  0x37   :  { %373 = vmatpush3.bf16.msra.mxu0 %v419_v5  ;;  %393 = vmatpush3.bf16.msra.mxu1 %v427_v10 }
  0x38   :  { %374 = vmatprep.subr.bf16.mxu0 %v525_v0  ;;  %394 = vmatprep.subr.bf16.mxu1 %v525_v0 }
  0x3b   :  { %375 = vmatpush3.bf16.msra.mxu0 %v420_v7  ;;  %395 = vmatpush3.bf16.msra.mxu1 %v428_v12 }
  0x3c   :  { %376 = vmatprep.subr.bf16.mxu0 %v525_v0  ;;  %396 = vmatprep.subr.bf16.mxu1 %v525_v0 }
  0x3f   :  { %377 = vmatpush3.bf16.msra.mxu0 %v421_v9  ;;  %397 = vmatpush3.bf16.msra.mxu1 %v429_v17 }
  0x40   :  { %378 = vmatprep.subr.bf16.mxu0 %v525_v0  ;;  %398 = vmatprep.subr.bf16.mxu1 %v525_v0 }
  0x43   :  { %379 = vmatpush3.bf16.msra.mxu0 %v422_v11  ;;  %399 = vmatpush3.bf16.msra.mxu1 %v430_v18 }
  0x44   :  { %380 = vmatprep.subr.bf16.mxu0 %v525_v0  ;;  %400 = vmatprep.subr.bf16.mxu1 %v525_v0 }
  0x47   :  { %381 = vmatpush3.bf16.msra.mxu0 %v423_v13  ;;  %401 = vmatpush3.bf16.msra.mxu1 %v431_v19 }
  0x4a   :  { %383 = vmatmul.mubr.bf16.vlgmr.msra.gmra.mxu0 %v65_v16 }
 0x10a   :  { %v171_v21 = vpop.f32.mrf.mxu0 }
 0x10b   :  { %v172_v23 = vadd.f32 %v321_v20, %v171_v21 }
 0x10c   :  { %v384_v22 = vpop.f32.mrf.mxu0 }
 0x10d   :  { %v178_v27 = vmax.f32 %v172_v23, 0.0 }
 0x10e   :  { %v174_v24 = vpop.f32.mrf.mxu0 }
 0x10f   :  { %v175_v25 = vadd.f32 %v321_v20, %v174_v24 }
 0x110   :  { %v385_v26 = vpop.f32.mrf.mxu0 }
 0x111   :  { %v179_v28 = vmax.f32 %v175_v25, 0.0 }
 0x113   :  { %v180_v29 = vpack.c.bf16 %v179_v28, %v178_v27 }
 0x115   :  { %403 = vmatmul.mubr.bf16.vlgmr.msra.gmra.mxu1 %v180_v29 }
 0x1d5   :  { %v286_v30 = vpop.f32.mrf.mxu1 }
 0x1d6   :  { %v287_v34 = vadd.f32 %v330_v31, %v286_v30 }
 0x1d7   :  { %v404_v32 = vpop.f32.mrf.mxu1 }
 0x1d9   :  { %v289_v33 = vpop.f32.mrf.mxu1 }
 0x1da   :  { %v290_v35 = vadd.f32 %v330_v31, %v289_v33 }
 0x1db   :  { %v405_v36 = vpop.f32.mrf.mxu1 }
 0x1dc   :  { %v346_v37 = vpack.c.bf16 %v290_v35, %v287_v34 }
 0x1de   :  { %347 = vst [vmem:[#allocation8] sm:$0xff] %v346_v37  }
 0x1df   :  { %503 = shalt.err (!%p500_p5)
}
 0x1e0   :  { %314 = dma.vmem_to_hbm [thread:$0]  %s309_s14, 128, %s590_s5, [#allocation4], %s519_s21, %s519_s21, %s520_s22  }
 0x1e1   :  { %516 = dma.done.wait [#allocation4], 128  }
 0x1e2   :  { %517 = vsyncadd [#allocation4], 4294967168 }
 0x1e3   :  { %318 = vsyncpa [#allocation3], 1 }
 0x1e4   :  { %319 = vsyncpa [#allocation6], 1 }
 0x1e5   :  { %320 = vsyncpa [#allocation4], 1 }

</bundles_post_ra>
